<compile_context>
chip_gen: v7x
topology: tpu7x:2x2x1
jax: 0.10.0
libtpu: 0.0.40
codegen_flags: <defaults>
</compile_context>

<pallas_src>
import math
import numpy as np
import jax
import jax.numpy as jnp
from jax.experimental import pallas as pl
from jax.experimental.pallas import tpu as pltpu


_LANE = 128
_TARGET_COL_TILE = 16384        # lane-dim tile target (multiple of 128)
_TARGET_TILE_BYTES = 4 << 20    # ~4 MiB per x/out tile (v7x per-step traffic target)
_FALLBACK_ELEMS = 1 << 20       # below this, a fused XLA broadcast-add wins


def _build_pe(max_len: int, d_model: int) -> jnp.ndarray:
    """Deterministic sinusoidal positional-encoding table, shape (max_len, d_model)."""
    position = np.arange(0, max_len, dtype=np.float32)[:, None]
    div_term = np.exp(np.arange(0, d_model, 2, dtype=np.float32)
                      * (-np.log(10000.0) / d_model))
    pe = np.zeros((max_len, d_model), dtype=np.float32)
    pe[:, 0::2] = np.sin(position * div_term)
    pe[:, 1::2] = np.cos(position * div_term)
    return jnp.asarray(pe)


def _add_pe_kernel(x_ref, pe_ref, o_ref):
    # x_ref / o_ref: (row_tile, col_tile) lane-dense tile of the flattened input.
    # pe_ref:        (pe_rows, col_tile) positional-encoding slice; pe_rows is 1
    #                or divides row_tile (replicated across the tile's row groups).
    x = x_ref[...]
    pe = pe_ref[...]
    r = x.shape[0]
    p = pe.shape[0]
    if p == r or p == 1:
        o_ref[...] = x + pe                      # direct / sublane-broadcast add
    else:
        o_ref[...] = x + jnp.tile(pe, (r // p, 1))


def _sublane_pack(dtype) -> int:
    # Rows per vreg for this dtype: 8 (f32), 16 (bf16), 32 (int8/fp8).
    return max(8, 32 // jnp.dtype(dtype).itemsize)


def _pick_fold(B: int, S: int, D: int) -> int:
    """Pick S1 (divisor of S) so x reshapes to (B*S1, (S//S1)*D) with dense rows.

    Only folds when the resulting lane dim stays a multiple of 128; prefers the
    smallest S1 that yields >= 8 rows (full sublane occupancy)."""
    if B >= 8:
        return 1
    best = 1
    for s1 in range(1, S + 1):
        if S % s1:
            continue
        if ((S // s1) * D) % _LANE:
            continue                             # keep lane dim 128-aligned
        best = s1
        if B * s1 >= 8:
            break                                # smallest lane-aligned fold with >= 8 rows
    return best


def _pick_col_tile(N: int, target: int) -> int:
    target = max(_LANE, (target // _LANE) * _LANE)
    if N <= target:
        return N                                 # full extent (always legal)
    # Largest multiple of 128 <= target that divides N -> no ragged trailing block.
    for c in range(target, _LANE - 1, -_LANE):
        if N % c == 0:
            return c
    return target                                # ragged trailing block (masked), still correct


def _pick_row_tile(R: int, step: int, target: int, allow_split: bool) -> int:
    # Row tiles must be a multiple of `step` (= lcm(sublane packing, S1)) unless full.
    if R <= step:
        return R                                 # full extent (always legal)
    target = max(step, (target // step) * step)
    rt = min(target, (R // step) * step)
    if allow_split and rt >= R:
        # Keep >= 2 blocks on a parallel axis so both v7x TensorCores get work.
        half = ((R // 2) // step) * step
        if half >= step:
            rt = half
    return rt


def positional_encoding_forward(x: jnp.ndarray,
                                pe_full: jnp.ndarray,
                                *,
                                force_pallas: bool = False,
                                col_tile_target: int = _TARGET_COL_TILE) -> jnp.ndarray:
    """x: (B, S, D); pe_full: (max_len, D). Returns x + pe[:S] (eval-mode dropout)."""
    B, S, D = x.shape

    # Small inputs: let XLA fuse the broadcast-add (it is already at roofline there).
    if not force_pallas and B * S * D < _FALLBACK_ELEMS:
        return x + pe_full[None, :S, :].astype(x.dtype)

    S1 = _pick_fold(B, S, D)
    S2 = S // S1
    R, N = B * S1, S2 * D
    itemsize = jnp.dtype(x.dtype).itemsize

    x2 = x.reshape(R, N)
    pe2 = pe_full[:S, :].astype(x.dtype).reshape(S1, N)

    col_tile = _pick_col_tile(N, col_tile_target)
    n_col = pl.cdiv(N, col_tile)

    sub = _sublane_pack(x.dtype)
    step = S1 * sub // math.gcd(S1, sub)
    row_target = max(sub, min(512, _TARGET_TILE_BYTES // max(1, col_tile * itemsize)))
    row_tile = _pick_row_tile(R, step, row_target, allow_split=(n_col == 1))
    n_row = pl.cdiv(R, row_tile)

    # Double-buffered working set: x in (x2) + out (x2) + pe (x2, tiny).
    tile_bytes = row_tile * col_tile * itemsize
    pe_bytes = S1 * col_tile * itemsize
    vmem_need = 4 * tile_bytes + 2 * pe_bytes
    vmem_limit = int(min(max(2 * vmem_need, 16 << 20), 64 << 20))

    out2 = pl.pallas_call(
        _add_pe_kernel,
        out_shape=jax.ShapeDtypeStruct((R, N), x.dtype),
        grid_spec=pltpu.PrefetchScalarGridSpec(
            num_scalar_prefetch=0,
            # Columns outer, rows inner: pe's block index is constant over the inner
            # axis, so its DMA is elided across all row steps of a column tile.
            grid=(n_col, n_row),
            in_specs=[
                pl.BlockSpec((row_tile, col_tile), lambda j, i: (i, j)),   # x tile
                pl.BlockSpec((S1, col_tile), lambda j, i: (0, j)),         # pe slice (resident)
            ],
            out_specs=pl.BlockSpec((row_tile, col_tile), lambda j, i: (i, j)),
        ),
        compiler_params=pltpu.CompilerParams(
            dimension_semantics=("parallel", "parallel"),
            vmem_limit_bytes=vmem_limit,
        ),
        # out = x + pe, same shape/dtype -> let XLA reuse x's HBM buffer when donated.
        input_output_aliases={0: 0},
    )(x2, pe2)

    return out2.reshape(B, S, D)


if __name__ == "__main__":
    MAX_LEN = 512

    def reference(x, pe_full, S):
        return x + pe_full[None, :S, :].astype(x.dtype)

    # --- Test 1: small shapes consistent with the module (batch=2, seq=8, d_model=32) ---
    B, S, D = 2, 8, 32
    x = jax.random.normal(jax.random.PRNGKey(0), (B, S, D), dtype=jnp.float32)
    pe_full = _build_pe(MAX_LEN, D)
    out = jax.block_until_ready(positional_encoding_forward(x, pe_full, force_pallas=True))
    np.testing.assert_allclose(np.asarray(out), np.asarray(reference(x, pe_full, S)),
                               rtol=1e-6, atol=1e-6)

    # --- Test 2: B >= 8 path, multi-row-block grid (row tile split for two TCs) ---
    B2, S2, D2 = 16, 64, 64
    xb = jax.random.normal(jax.random.PRNGKey(0), (B2, S2, D2), dtype=jnp.float32)
    pe_full_b = _build_pe(MAX_LEN, D2)
    out_b = jax.block_until_ready(positional_encoding_forward(xb, pe_full_b, force_pallas=True))
    np.testing.assert_allclose(np.asarray(out_b), np.asarray(reference(xb, pe_full_b, S2)),
                               rtol=1e-6, atol=1e-6)

    # --- Test 3: small batch (B<8) fold + multiple column tiles + in-kernel pe replication ---
    B3, S3, D3 = 4, 64, 128
    xc = jax.random.normal(jax.random.PRNGKey(0), (B3, S3, D3), dtype=jnp.float32)
    pe_full_c = _build_pe(MAX_LEN, D3)
    out_c = jax.block_until_ready(
        positional_encoding_forward(xc, pe_full_c, force_pallas=True, col_tile_target=2048))
    np.testing.assert_allclose(np.asarray(out_c), np.asarray(reference(xc, pe_full_c, S3)),
                               rtol=1e-6, atol=1e-6)

    print("KERNEL_OK")
</pallas_src>

<mosaic_0001>
module attributes {stable_mosaic.version = 11 : i64} {
  func.func @_add_pe_kernel(%arg0: i32, %arg1: i32, %arg2: memref<4x128xf32, #tpu.memory_space<vmem>>, %arg3: memref<2x128xf32, #tpu.memory_space<vmem>>, %arg4: memref<4x128xf32, #tpu.memory_space<vmem>>) attributes {dimension_semantics = [#tpu.dimension_semantics<parallel>, #tpu.dimension_semantics<parallel>], iteration_bounds = array<i64: 1, 1>, scalar_prefetch = 0 : i64, scratch_operands = 0 : i64, tpu.core_type = #tpu.core_type<tc>, window_params = [{transform_indices = @transform_0, window_bounds = array<i64: 4, 128>}, {transform_indices = @transform_1, window_bounds = array<i64: 2, 128>}, {transform_indices = @transform_2, window_bounds = array<i64: 4, 128>}]} {
    %c0 = arith.constant 0 : index
    %c0_0 = arith.constant 0 : index
    %0 = vector.load %arg2[%c0, %c0_0] : memref<4x128xf32, #tpu.memory_space<vmem>>, vector<4x128xf32>
    %c0_1 = arith.constant 0 : index
    %c0_2 = arith.constant 0 : index
    %1 = vector.load %arg3[%c0_1, %c0_2] : memref<2x128xf32, #tpu.memory_space<vmem>>, vector<2x128xf32>
    %2 = tpu.concatenate %1, %1 in 0 : vector<2x128xf32>, vector<2x128xf32> -> vector<4x128xf32>
    %3 = arith.addf %0, %2 : vector<4x128xf32>
    %c0_3 = arith.constant 0 : index
    %c0_4 = arith.constant 0 : index
    %4 = vector.load %arg4[%c0_3, %c0_4] : memref<4x128xf32, #tpu.memory_space<vmem>>, vector<4x128xf32>
    tpu.vector_store %arg4[%c0_3, %c0_4], %3 {strides = array<i32>} : memref<4x128xf32, #tpu.memory_space<vmem>>, vector<4x128xf32>,
    return
  }
  func.func @transform_0(%arg0: i32, %arg1: i32) -> (i32, i32) {
    %c0_i32 = arith.constant 0 : i32
    return %arg1, %arg0 : i32, i32
  }
  func.func @transform_1(%arg0: i32, %arg1: i32) -> (i32, i32) {
    %c0_i32 = arith.constant 0 : i32
    %c0_i32_0 = arith.constant 0 : i32
    return %c0_i32, %arg0 : i32, i32
  }
  func.func @transform_2(%arg0: i32, %arg1: i32) -> (i32, i32) {
    %c0_i32 = arith.constant 0 : i32
    return %arg1, %arg0 : i32, i32
  }
}

</mosaic_0001>

<bundles_post_ra>
// kernel: tpu_custom_call.1
= control target key start
LH: loop header
LB: loop body
LE: loop exit
PB: predicated region body
PF: predicated region fallthrough
CT: control target
= control target key end

     0   :  { %7 = vsyncpa [#allocation3], 0  ;;  %s142_s0 = inlined_call_operand.hbm [shape: f32[4,128], index: 0, kind: input, shape index: {}, may-alias: {0,2}]   ;;  %s143_s1 = inlined_call_operand.vmem [shape: f32[2,128], index: 1, kind: input, shape index: {}]   ;;  %s144_s2 = inlined_call_operand.hbm [shape: f32[4,128], index: 2, kind: output, shape index: {}, may-alias: {0,2}]  }
   0x1   :  { %8 = vsyncpa [#allocation4], 0  ;;  %s98_s9 = smov [#allocation2]   ;;  %s50_s13 = scalar_lea.hbm %s142_s0, 64 }
   0x2   :  { %s15_s10 = sshll.u32 %s98_s9, 4  ;;  %p51_p0 = scmp.ne.s32.totalorder %s142_s0, %s50_s13  ;;  %s16_s10 = int_to_ptr.vmem [resolvable:$true] %s15_s10 }
   0x3   :  { %p54_p1 = scmp.lt.u32.totalorder %s50_s13, %s142_s0 }
   0x5   :  { %p56_p2 = pnand %p54_p1, %p51_p0 }
   0x7   :  { %59 = shalt.err (!%p56_p2)
}
   0x8   :  { %s60_s18 = scalar_lea.vmem %s16_s10, 64  ;;  %p65_p4 = scmp.lt.s32.totalorder %s16_s10, %s16_s10 }
   0x9   :  { %p61_p3 = scmp.ne.s32.totalorder %s16_s10, %s60_s18  ;;  %p66_p5 = scmp.lt.s32.totalorder %s60_s18, %s60_s18 }
   0xb   :  { %p67_p6 = por %p66_p5, %p65_p4 }
   0xd   :  { %p68_p7 = pnand %p67_p6, %p61_p3 }
   0xf   :  { %71 = shalt.err (!%p68_p7)
}
  0x10   :  { %18 = dma.hbm_to_vmem [thread:$0]  %s142_s0, 64, %s16_s10, [#allocation3]  }
  0x11   :  { %94 = dma.done.wait [#allocation3], 64  }
  0x12   :  { %95 = vsyncadd [#allocation3], 4294967232  ;;  %v25_v0 = vld [vmem:[%s143_s1] sm:$0x3]  ;;  %vm29_vm0 = vcmask 1041408   ;;  %s99_s23 = smov [#allocation5]  }
  0x13   :  { %v24_v1 = vld [vmem:[#allocation2] sm:$0xf]  ;;  %v27_v2 = vrot.slane %v25_v0, 6  ;;  %s39_s24 = sshll.u32 %s99_s23, 4  ;;  %s40_s24 = int_to_ptr.vmem [resolvable:$true] %s39_s24 }
  0x14   :  { %s72_s25 = scalar_lea.vmem %s40_s24, 64  ;;  %p77_p9 = scmp.lt.s32.totalorder %s40_s24, %s40_s24 }
  0x15   :  { %v30_v3 = vsel %vm29_vm0, %v25_v0, %v27_v2  ;;  %p73_p8 = scmp.ne.s32.totalorder %s40_s24, %s72_s25  ;;  %p78_p10 = scmp.lt.s32.totalorder %s72_s25, %s72_s25 }
  0x16   :  { %v31_v4 = vadd.f32 %v30_v3, %v24_v1 }
  0x17   :  { %p79_p11 = por %p78_p10, %p77_p9 }
  0x18   :  { %32 = vst [vmem:[#allocation5] sm:$0xf] %v31_v4 }
  0x19   :  { %p80_p12 = pnand %p79_p11, %p73_p8 }
  0x1b   :  { %83 = shalt.err (!%p80_p12)
}
  0x1c   :  { %s84_s1 = scalar_lea.hbm %s144_s2, 64 }
  0x1d   :  { %p85_p13 = scmp.ne.s32.totalorder %s144_s2, %s84_s1  ;;  %p88_p0 = scmp.lt.u32.totalorder %s84_s1, %s144_s2 }
  0x1f   :  { %p90_p1 = pnand %p88_p0, %p85_p13 }
  0x21   :  { %93 = shalt.err (!%p90_p1)
}
  0x22   :  { %42 = dma.vmem_to_hbm [thread:$0]  %s40_s24, 64, %s144_s2, [#allocation4]  }
  0x23   :  { %96 = dma.done.wait [#allocation4], 64  }
  0x24   :  { %97 = vsyncadd [#allocation4], 4294967232 }
  0x25   :  { %46 = vsyncpa [#allocation3], 1 }
  0x26   :  { %47 = vsyncpa [#allocation4], 1 }

</bundles_post_ra>
